<compile_context>
chip_gen: v6e
topology: v6e:2x2x1
jax: 0.10.0
libtpu: 0.0.40
codegen_flags: <defaults>
</compile_context>

<pallas_src>
import functools

import jax
import jax.numpy as jnp
from jax.experimental import pallas as pl
from jax.experimental.pallas import tpu as pltpu


def _min_dist_kernel(x_ref, s_ref, o_ref, *, d_total, tk, n_group, n_samples):
    """Grid point (n, k): batch group n, feature chunk k.

    x_ref: (Gn, 1, TK)  inputs chunk (native dtype)
    s_ref: (Gn, S, TK)  samples chunk (native dtype)
    o_ref: (Gn, S, 1)   f32 per-(batch, sample) squared distance; resident
                        across the k axis and used directly as the accumulator.
    """
    k = pl.program_id(1)

    # Zero the resident accumulator at the start of each batch group.
    @pl.when(k == 0)
    def _():
        o_ref[...] = jnp.zeros_like(o_ref)

    need_mask = (d_total % tk) != 0
    if need_mask:
        # The final chunk overhangs the array: its tail lanes hold unspecified
        # data and must be zeroed before the squared difference.
        valid = d_total - k * tk
        col = jax.lax.broadcasted_iota(jnp.int32, (n_samples, tk), 1)
        mask = col < valid

    for g in range(n_group):                          # static unroll; Gn small
        x = x_ref[g].astype(jnp.float32)              # (1, TK)
        s = s_ref[g].astype(jnp.float32)              # (S, TK)
        d = s - x                                     # sublane-broadcast
        if need_mask:
            d = jnp.where(mask, d, 0.0)
        o_ref[g] += jnp.sum(d * d, axis=-1, keepdims=True)   # (S, 1) f32


def _round_up(x, m):
    return (x + m - 1) // m * m


def min_dist_loss(inputs, samples, *,
                  vmem_budget_bytes=24 * 1024 * 1024,
                  target_dma_bytes=4 * 1024 * 1024):
    """inputs: (N, C, H, W); samples: (N, S, C, H, W) -> scalar f32 loss."""
    N, C, H, W = inputs.shape
    assert samples.shape[0] == N, "batch sizes must match"
    assert samples.shape[2:] == (C, H, W), "sample spatial dims must match inputs"
    S = samples.shape[1]
    D = C * H * W

    # Layout-only flatten; native dtypes are streamed (no wrapper cast/pad).
    x = inputs.reshape(N, 1, D)
    s = samples.reshape(N, S, D)

    s_item = jnp.dtype(samples.dtype).itemsize
    x_item = jnp.dtype(inputs.dtype).itemsize
    s_sub = max(8, 32 // s_item)      # sublane tile height for samples dtype
    x_sub = max(8, 32 // x_item)      # sublane tile height for inputs dtype

    Dp = _round_up(D, 128)

    def out_bytes(gn):
        # (Gn, S, 1) f32 block: S padded to 8 sublanes, 1 lane padded to 128.
        return 2 * gn * _round_up(S, 8) * 128 * 4

    def footprint(gn, tk):
        # Double-buffered samples + double-buffered sublane-padded x + output.
        s_bytes = 2 * gn * _round_up(S, s_sub) * tk * s_item
        x_bytes = 2 * gn * x_sub * tk * x_item
        return s_bytes + x_bytes + out_bytes(gn)

    # Largest 128-lane-multiple chunk that fits the budget for one batch elem.
    per_lane = 2 * _round_up(S, s_sub) * s_item + 2 * x_sub * x_item
    tk = max(128, ((vmem_budget_bytes - out_bytes(1)) // per_lane) // 128 * 128)
    tk = min(tk, Dp)

    # If the whole feature dim fits in one chunk, fold batch elements into each
    # grid step until the per-step samples DMA is comfortably large.
    Gn = 1
    if tk >= Dp:
        tk = Dp
        for gn in range(2, N + 1):
            if N % gn != 0:
                continue
            if footprint(gn, tk) > vmem_budget_bytes:
                break
            Gn = gn
            if Gn * _round_up(S, s_sub) * tk * s_item >= target_dma_bytes:
                break

    num_k = pl.cdiv(D, tk)

    kernel = functools.partial(_min_dist_kernel, d_total=D, tk=tk,
                               n_group=Gn, n_samples=S)

    cost = pl.CostEstimate(
        flops=3 * N * S * D,
        transcendentals=0,
        bytes_accessed=N * S * D * s_item + N * D * x_item + N * S * 4,
    )

    per_sample = pl.pallas_call(
        kernel,
        out_shape=jax.ShapeDtypeStruct((N, S, 1), jnp.float32),
        grid_spec=pltpu.PrefetchScalarGridSpec(
            num_scalar_prefetch=0,
            grid=(N // Gn, num_k),
            in_specs=[
                # one (Gn, 1, tk) inputs chunk per step
                pl.BlockSpec((Gn, 1, tk), lambda n, k: (n, 0, k)),
                # one (Gn, S, tk) samples chunk per step
                pl.BlockSpec((Gn, S, tk), lambda n, k: (n, 0, k)),
            ],
            # per-group output block, resident across k -> accumulator
            out_specs=pl.BlockSpec((Gn, S, 1), lambda n, k: (n, 0, 0)),
        ),
        compiler_params=pltpu.CompilerParams(
            # batch groups are independent (megacore-shardable); the feature
            # axis is a reduction with a resident output block -> "arbitrary".
            dimension_semantics=("parallel", "arbitrary"),
            vmem_limit_bytes=int(max(footprint(Gn, tk) + (8 << 20), 32 << 20)),
        ),
        cost_estimate=cost,
    )(x, s)

    # Tiny final reduction (N*S values) in plain JAX: min over samples, sum
    # over the batch.
    per_sample = per_sample[..., 0]                    # (N, S)
    return jnp.sum(jnp.min(per_sample, axis=1))


if __name__ == "__main__":
    key = jax.random.PRNGKey(0)
    k1, k2 = jax.random.split(key)

    # Small shapes consistent with the module's forward:
    #   inputs:  (N, C, H, W) = (2, 4, 16, 16)
    #   samples: (N, S, C, H, W) = (2, 8, 4, 16, 16)
    N, S, C, H, W = 2, 8, 4, 16, 16
    inputs = jax.random.normal(k1, (N, C, H, W), dtype=jnp.float32)
    samples = jax.random.normal(k2, (N, S, C, H, W), dtype=jnp.float32)

    loss = jax.block_until_ready(min_dist_loss(inputs, samples))

    # Pure-JAX reference (same math as the torch module).
    diff = samples - inputs[:, None]                       # (N, S, C, H, W)
    ref = jnp.sum(jnp.min(jnp.sum(diff * diff, axis=(2, 3, 4)), axis=1))
    assert jnp.allclose(loss, ref, rtol=1e-5, atol=1e-5), (loss, ref)

    # Also exercise the masked / multi-chunk path: D = 330 (not a multiple of
    # 128), tiny budget to force tk = 128 and a partial final chunk.
    N2, S2, C2, H2, W2 = 2, 5, 3, 10, 11
    inputs2 = jax.random.normal(k1, (N2, C2, H2, W2), dtype=jnp.float32)
    samples2 = jax.random.normal(k2, (N2, S2, C2, H2, W2), dtype=jnp.float32)
    loss2 = jax.block_until_ready(
        min_dist_loss(inputs2, samples2, vmem_budget_bytes=20_000))
    diff2 = samples2 - inputs2[:, None]
    ref2 = jnp.sum(jnp.min(jnp.sum(diff2 * diff2, axis=(2, 3, 4)), axis=1))
    assert jnp.allclose(loss2, ref2, rtol=1e-5, atol=1e-5), (loss2, ref2)

    print("KERNEL_OK")
</pallas_src>

<mosaic_0001>
module attributes {stable_mosaic.version = 11 : i64} {
  func.func @_min_dist_kernel(%arg0: i32, %arg1: i32, %arg2: memref<2x1x1024xf32, #tpu.memory_space<vmem>>, %arg3: memref<2x8x1024xf32, #tpu.memory_space<vmem>>, %arg4: memref<2x8x1xf32, #tpu.memory_space<vmem>>) attributes {dimension_semantics = [#tpu.dimension_semantics<parallel>, #tpu.dimension_semantics<arbitrary>], iteration_bounds = array<i64: 1, 1>, scalar_prefetch = 0 : i64, scratch_operands = 0 : i64, tpu.core_type = #tpu.core_type<tc>, window_params = [{transform_indices = @transform_0, window_bounds = array<i64: 2, 1, 1024>}, {transform_indices = @transform_1, window_bounds = array<i64: 2, 8, 1024>}, {transform_indices = @transform_2, window_bounds = array<i64: 2, 8, 1>}]} {
    %c0_i32 = arith.constant 0 : i32
    %0 = arith.cmpi eq, %arg1, %c0_i32 : i32
    %1 = arith.extui %0 : i1 to i32
    %c0_i32_0 = arith.constant 0 : i32
    %2 = arith.cmpi ne, %1, %c0_i32_0 : i32
    scf.if %2 {
      %cst_24 = arith.constant 0.000000e+00 : f32
      %33 = vector.broadcast %cst_24 : f32 to vector<2x8x1xf32>
      %c0_25 = arith.constant 0 : index
      %c0_26 = arith.constant 0 : index
      %c0_27 = arith.constant 0 : index
      %34 = vector.load %arg4[%c0_25, %c0_26, %c0_27] : memref<2x8x1xf32, #tpu.memory_space<vmem>>, vector<2x8x1xf32>
      tpu.vector_store %arg4[%c0_25, %c0_26, %c0_27], %33 {strides = array<i32>} : memref<2x8x1xf32, #tpu.memory_space<vmem>>, vector<2x8x1xf32>,
    } else {
    }
    %c0 = arith.constant 0 : index
    %c0_1 = arith.constant 0 : index
    %c0_2 = arith.constant 0 : index
    %3 = vector.load %arg2[%c0, %c0_1, %c0_2] : memref<2x1x1024xf32, #tpu.memory_space<vmem>>, vector<1x1x1024xf32>
    %4 = vector.shape_cast %3 : vector<1x1x1024xf32> to vector<1x1024xf32>
    %c0_3 = arith.constant 0 : index
    %c0_4 = arith.constant 0 : index
    %c0_5 = arith.constant 0 : index
    %5 = vector.load %arg3[%c0_3, %c0_4, %c0_5] : memref<2x8x1024xf32, #tpu.memory_space<vmem>>, vector<1x8x1024xf32>
    %6 = vector.shape_cast %5 : vector<1x8x1024xf32> to vector<8x1024xf32>
    %7 = vector.broadcast %4 : vector<1x1024xf32> to vector<8x1024xf32>
    %8 = arith.subf %6, %7 : vector<8x1024xf32>
    %c0_6 = arith.constant 0 : index
    %c0_7 = arith.constant 0 : index
    %c0_8 = arith.constant 0 : index
    %9 = vector.load %arg4[%c0_6, %c0_7, %c0_8] : memref<2x8x1xf32, #tpu.memory_space<vmem>>, vector<1x8x1xf32>
    %10 = vector.shape_cast %9 : vector<1x8x1xf32> to vector<8x1xf32>
    %11 = arith.mulf %8, %8 : vector<8x1024xf32>
    %cst = arith.constant dense<0.000000e+00> : vector<8xf32>
    %12 = vector.multi_reduction <add>, %11, %cst [1] : vector<8x1024xf32> to vector<8xf32>
    %13 = vector.shape_cast %12 : vector<8xf32> to vector<8x1xf32>
    %14 = arith.addf %10, %13 : vector<8x1xf32>
    %c0_9 = arith.constant 0 : index
    %c0_10 = arith.constant 0 : index
    %c0_11 = arith.constant 0 : index
    %15 = vector.load %arg4[%c0_9, %c0_10, %c0_11] : memref<2x8x1xf32, #tpu.memory_space<vmem>>, vector<1x8x1xf32>
    %16 = vector.shape_cast %15 : vector<1x8x1xf32> to vector<8x1xf32>
    %17 = vector.shape_cast %14 : vector<8x1xf32> to vector<1x8x1xf32>
    tpu.vector_store %arg4[%c0_9, %c0_10, %c0_11], %17 {strides = array<i32>} : memref<2x8x1xf32, #tpu.memory_space<vmem>>, vector<1x8x1xf32>,
    %c1 = arith.constant 1 : index
    %c0_12 = arith.constant 0 : index
    %c0_13 = arith.constant 0 : index
    %18 = vector.load %arg2[%c1, %c0_12, %c0_13] : memref<2x1x1024xf32, #tpu.memory_space<vmem>>, vector<1x1x1024xf32>
    %19 = vector.shape_cast %18 : vector<1x1x1024xf32> to vector<1x1024xf32>
    %c1_14 = arith.constant 1 : index
    %c0_15 = arith.constant 0 : index
    %c0_16 = arith.constant 0 : index
    %20 = vector.load %arg3[%c1_14, %c0_15, %c0_16] : memref<2x8x1024xf32, #tpu.memory_space<vmem>>, vector<1x8x1024xf32>
    %21 = vector.shape_cast %20 : vector<1x8x1024xf32> to vector<8x1024xf32>
    %22 = vector.broadcast %19 : vector<1x1024xf32> to vector<8x1024xf32>
    %23 = arith.subf %21, %22 : vector<8x1024xf32>
    %c1_17 = arith.constant 1 : index
    %c0_18 = arith.constant 0 : index
    %c0_19 = arith.constant 0 : index
    %24 = vector.load %arg4[%c1_17, %c0_18, %c0_19] : memref<2x8x1xf32, #tpu.memory_space<vmem>>, vector<1x8x1xf32>
    %25 = vector.shape_cast %24 : vector<1x8x1xf32> to vector<8x1xf32>
    %26 = arith.mulf %23, %23 : vector<8x1024xf32>
    %cst_20 = arith.constant dense<0.000000e+00> : vector<8xf32>
    %27 = vector.multi_reduction <add>, %26, %cst_20 [1] : vector<8x1024xf32> to vector<8xf32>
    %28 = vector.shape_cast %27 : vector<8xf32> to vector<8x1xf32>
    %29 = arith.addf %25, %28 : vector<8x1xf32>
    %c1_21 = arith.constant 1 : index
    %c0_22 = arith.constant 0 : index
    %c0_23 = arith.constant 0 : index
    %30 = vector.load %arg4[%c1_21, %c0_22, %c0_23] : memref<2x8x1xf32, #tpu.memory_space<vmem>>, vector<1x8x1xf32>
    %31 = vector.shape_cast %30 : vector<1x8x1xf32> to vector<8x1xf32>
    %32 = vector.shape_cast %29 : vector<8x1xf32> to vector<1x8x1xf32>
    tpu.vector_store %arg4[%c1_21, %c0_22, %c0_23], %32 {strides = array<i32>} : memref<2x8x1xf32, #tpu.memory_space<vmem>>, vector<1x8x1xf32>,
    return
  }
  func.func @transform_0(%arg0: i32, %arg1: i32) -> (i32, i32, i32) {
    %c0_i32 = arith.constant 0 : i32
    %c0_i32_0 = arith.constant 0 : i32
    return %arg0, %c0_i32, %arg1 : i32, i32, i32
  }
  func.func @transform_1(%arg0: i32, %arg1: i32) -> (i32, i32, i32) {
    %c0_i32 = arith.constant 0 : i32
    %c0_i32_0 = arith.constant 0 : i32
    return %arg0, %c0_i32, %arg1 : i32, i32, i32
  }
  func.func @transform_2(%arg0: i32, %arg1: i32) -> (i32, i32, i32) {
    %c0_i32 = arith.constant 0 : i32
    %c0_i32_0 = arith.constant 0 : i32
    %c0_i32_1 = arith.constant 0 : i32
    return %arg0, %c0_i32, %c0_i32_0 : i32, i32, i32
  }
}

</mosaic_0001>

<bundles_post_ra>
// kernel: tpu_custom_call.1
= control target key start
LH: loop header
LB: loop body
LE: loop exit
PB: predicated region body
PF: predicated region fallthrough
CT: control target
= control target key end

     0   :  { %7 = vsyncpa [#allocation3], 0  ;;  %s325_s0 = inlined_call_operand.hbm [shape: f32[2,1,1024], index: 0, kind: input, shape index: {}]   ;;  %s326_s1 = inlined_call_operand.hbm [shape: f32[2,8,1024], index: 1, kind: input, shape index: {}]   ;;  %s327_s2 = inlined_call_operand.vmem [shape: f32[2,8,1], index: 2, kind: output, shape index: {}]  }
   0x1   :  { %8 = vsyncpa [#allocation5], 0  ;;  %s265_s9 = smov [#allocation2]  }
   0x2   :  { %s14_s10 = sshll.u32 %s265_s9, 4  ;;  %s15_s10 = int_to_ptr.vmem [resolvable:$true] %s14_s10 }
   0x3   :  { %s229_s11 = scalar_lea.vmem %s15_s10, 256  ;;  %p234_p1 = scmp.lt.s32.totalorder %s15_s10, %s15_s10 }
   0x4   :  { %p230_p0 = scmp.ne.s32.totalorder %s15_s10, %s229_s11  ;;  %p235_p2 = scmp.lt.s32.totalorder %s229_s11, %s229_s11 }
   0x6   :  { %p236_p3 = por %p235_p2, %p234_p1 }
   0x8   :  { %p237_p4 = pnand %p236_p3, %p230_p0 }
   0xa   :  { %240 = shalt.err (!%p237_p4)
}
   0xb   :  { %s266_s12 = smov 128   ;;  %s267_s13 = smov 8  }
   0xc   :  { %20 = dma.hbm_to_vmem [thread:$0]  %s325_s0, 256, %s15_s10, [#allocation3], %s266_s12, %s266_s12, %s267_s13  }
   0xd   :  { %s268_s16 = smov [#allocation4]  }
   0xe   :  { %s26_s17 = sshll.u32 %s268_s16, 4  ;;  %s27_s17 = int_to_ptr.vmem [resolvable:$true] %s26_s17 }
   0xf   :  { %s249_s18 = scalar_lea.vmem %s27_s17, 2048  ;;  %p254_p6 = scmp.lt.s32.totalorder %s27_s17, %s27_s17 }
  0x10   :  { %p250_p5 = scmp.ne.s32.totalorder %s27_s17, %s249_s18  ;;  %p255_p7 = scmp.lt.s32.totalorder %s249_s18, %s249_s18 }
  0x12   :  { %p256_p8 = por %p255_p7, %p254_p6 }
  0x14   :  { %p257_p9 = pnand %p256_p8, %p250_p5 }
  0x16   :  { %260 = shalt.err (!%p257_p9)
}
  0x17   :  { %s269_s19 = smov 1024   ;;  %s270_s20 = smov 64  }
  0x18   :  { %32 = dma.hbm_to_vmem [thread:$0]  %s326_s1, 2048, %s27_s17, [#allocation5], %s269_s19, %s269_s19, %s270_s20  }
  0x19   :  { %261 = dma.done.wait [#allocation3], 256  }
  0x1a   :  { %262 = vsyncadd [#allocation3], 4294967040 }
  0x1b   :  { %263 = dma.done.wait [#allocation5], 2048  }
  0x1c   :  { %264 = vsyncadd [#allocation5], 4294965248  ;;  %v56_v0 = vlaneseq  ;;  %vm43_vm0 = vcmask 7168   ;;  %v271_v1 = vmov 0.0   ;;  %v46_v9 = vld [vmem:[#allocation2] sm:$0xff]  ;;  %v47_v10 = vld [vmem:[#allocation4] sm:$0xff] }
  0x1d   :  { %44 = vst.msk [vmem:[%s327_s2] sm:$0xff] %vm43_vm0, %v271_v1  ;;  %45 = vst.msk [vmem:[%s327_s2 + $0x8] sm:$0xff] %vm43_vm0, %v271_v1  ;;  %v48_v11 = vld [vmem:[#allocation4 + $0x8] sm:$0xff]  ;;  %v49_v13 = vld [vmem:[#allocation4 + $0x10] sm:$0xff] }
  0x1e   :  { %v301_v2 = vshrl.u32 %v56_v0, 7  ;;  %v50_v14 = vld [vmem:[#allocation4 + $0x18] sm:$0xff]  ;;  %v51_v19 = vld [vmem:[#allocation4 + $0x20] sm:$0xff]  ;;  %v52_v23 = vld [vmem:[#allocation4 + $0x28] sm:$0xff] }
  0x1f   :  { %v126_v29 = vld [vmem:[#allocation2 + $0x8] sm:$0xff]  ;;  %v53_v30 = vld [vmem:[#allocation4 + $0x30] sm:$0xff]  ;;  %v128_v38 = vld [vmem:[#allocation4 + $0x40] sm:$0xff] }
  0x20   :  { %v58_v3 = vsub.s32 0, %v301_v2  ;;  %v62_v4 = vsub.s32 1, %v301_v2  ;;  %v66_v5 = vsub.s32 2, %v301_v2  ;;  %v70_v6 = vsub.s32 3, %v301_v2  ;;  %v129_v39 = vld [vmem:[#allocation4 + $0x48] sm:$0xff]  ;;  %v130_v41 = vld [vmem:[#allocation4 + $0x50] sm:$0xff] }
  0x21   :  { %v74_v7 = vsub.s32 4, %v301_v2  ;;  %v78_v8 = vsub.s32 5, %v301_v2  ;;  %v82_v12 = vsub.s32 6, %v301_v2  ;;  %v86_v22 = vsub.s32 7, %v301_v2  ;;  %v131_v42 = vld [vmem:[#allocation4 + $0x58] sm:$0xff]  ;;  %v132_v52 = vld [vmem:[#allocation4 + $0x60] sm:$0xff] }
  0x22   :  { %v59_v15 = vrot.slane %v46_v9, %v58_v3  ;;  %v63_v16 = vrot.slane %v46_v9, %v62_v4  ;;  %v67_v17 = vrot.slane %v46_v9, %v66_v5  ;;  %v71_v18 = vrot.slane %v46_v9, %v70_v6  ;;  %v54_v46 = vld [vmem:[#allocation4 + $0x38] sm:$0xff]  ;;  %v133_v61 = vld [vmem:[#allocation4 + $0x68] sm:$0xff] }
  0x23   :  { %v75_v20 = vrot.slane %v46_v9, %v74_v7  ;;  %v79_v21 = vrot.slane %v46_v9, %v78_v8  ;;  %v83_v28 = vrot.slane %v46_v9, %v82_v12  ;;  %v87_v35 = vrot.slane %v46_v9, %v86_v22 }
  0x24   :  { %v96_v24 = vsub.f32 %v47_v10, %v59_v15  ;;  %v97_v25 = vsub.f32 %v48_v11, %v63_v16  ;;  %v98_v26 = vsub.f32 %v49_v13, %v67_v17  ;;  %v99_v27 = vsub.f32 %v50_v14, %v71_v18  ;;  %v135_v13 = vld [vmem:[#allocation4 + $0x78] sm:$0xff] }
  0x25   :  { %v100_v31 = vsub.f32 %v51_v19, %v75_v20  ;;  %v101_v36 = vsub.f32 %v52_v23, %v79_v21  ;;  %v140_v43 = vrot.slane %v126_v29, %v58_v3  ;;  %v144_v44 = vrot.slane %v126_v29, %v62_v4 }
  0x26   :  { %v105_v32 = vmul.f32 %v96_v24, %v96_v24  ;;  %v106_v33 = vmul.f32 %v97_v25, %v97_v25  ;;  %v107_v34 = vmul.f32 %v98_v26, %v98_v26  ;;  %v108_v37 = vmul.f32 %v99_v27, %v99_v27  ;;  %v104_v27 = vld [vmem:[%s327_s2] sm:$0xff] }
  0x27   :  { %v148_v45 = vrot.slane %v126_v29, %v66_v5  ;;  %v102_v47 = vsub.f32 %v53_v30, %v83_v28  ;;  %v152_v48 = vrot.slane %v126_v29, %v70_v6  ;;  %v156_v49 = vrot.slane %v126_v29, %v74_v7  ;;  %v134_v5 = vld [vmem:[#allocation4 + $0x70] sm:$0xff]  ;;  %v212_v30 = vld [vmem:[%s327_s2 + $0x8] sm:$0xff] }
  0x28   :  { %v113_v40 = vadd.f32 %v106_v33, %v105_v32  ;;  %v109_v50 = vmul.f32 %v100_v31, %v100_v31  ;;  %v177_v53 = vsub.f32 %v128_v38, %v140_v43  ;;  %v178_v54 = vsub.f32 %v129_v39, %v144_v44 }
  0x29   :  { %v160_v55 = vrot.slane %v126_v29, %v78_v8  ;;  %v179_v56 = vsub.f32 %v130_v41, %v148_v45  ;;  %v180_v57 = vsub.f32 %v131_v42, %v152_v48  ;;  %v103_v58 = vsub.f32 %v54_v46, %v87_v35 }
  0x2a   :  { %v114_v51 = vadd.f32 %v113_v40, %v107_v34  ;;  %v110_v59 = vmul.f32 %v101_v36, %v101_v36  ;;  %v187_v62 = vmul.f32 %v177_v53, %v177_v53  ;;  %v164_v63 = vrot.slane %v126_v29, %v82_v12 }
  0x2b   :  { %v181_v0 = vsub.f32 %v132_v52, %v156_v49  ;;  %v188_v1 = vmul.f32 %v178_v54, %v178_v54  ;;  %v189_v2 = vmul.f32 %v179_v56, %v179_v56  ;;  %v111_v3 = vmul.f32 %v102_v47, %v102_v47 }
  0x2c   :  { %v115_v60 = vadd.f32 %v114_v51, %v108_v37  ;;  %v168_v6 = vrot.slane %v126_v29, %v86_v22  ;;  %v182_v7 = vsub.f32 %v133_v61, %v160_v55  ;;  %v190_v9 = vmul.f32 %v180_v57, %v180_v57 }
  0x2d   :  { %v195_v10 = vadd.f32 %v188_v1, %v187_v62  ;;  %v112_v11 = vmul.f32 %v103_v58, %v103_v58  ;;  %v183_v14 = vsub.f32 %v134_v5, %v164_v63  ;;  %v191_v15 = vmul.f32 %v181_v0, %v181_v0 }
  0x2e   :  { %v116_v4 = vadd.f32 %v115_v60, %v109_v50  ;;  %v184_v18 = vsub.f32 %v135_v13, %v168_v6  ;;  %v192_v19 = vmul.f32 %v182_v7, %v182_v7 }
  0x2f   :  { %v196_v16 = vadd.f32 %v195_v10, %v189_v2  ;;  %v193_v21 = vmul.f32 %v183_v14, %v183_v14 }
  0x30   :  { %v117_v8 = vadd.f32 %v116_v4, %v110_v59  ;;  %v194_v24 = vmul.f32 %v184_v18, %v184_v18 }
  0x31   :  { %v197_v12 = vadd.f32 %v196_v16, %v190_v9 }
  0x32   :  { %v118_v17 = vadd.f32 %v117_v8, %v111_v3 }
  0x33   :  { %v198_v23 = vadd.f32 %v197_v12, %v191_v15 }
  0x34   :  { %v119_v20 = vadd.f32 %v118_v17, %v112_v11 }
  0x35   :  { %v199_v25 = vadd.f32 %v198_v23, %v192_v19 }
  0x36   :  { %120 = vadd.xlane.f32.xlu0 %v119_v20 }
  0x37   :  { %v200_v22 = vadd.f32 %v199_v25, %v193_v21 }
  0x39   :  { %v201_v26 = vadd.f32 %v200_v22, %v194_v24 }
  0x3b   :  { %202 = vadd.xlane.f32.xlu0 %v201_v26 }
  0xbf   :  { %v121_v28 = vpop.xlane.xlu0 %120 }
  0xc0   :  { %v122_v29 = vadd.f32 %v121_v28, %v104_v27 }
  0xc2   :  { %124 = vst.msk [vmem:[%s327_s2] sm:$0xff] %vm43_vm0, %v122_v29 }
  0xc4   :  { %v203_v31 = vpop.xlane.xlu0 %202 }
  0xc5   :  { %v204_v32 = vadd.f32 %v212_v30, %v203_v31 }
  0xc7   :  { %213 = vst.msk [vmem:[%s327_s2 + $0x8] sm:$0xff] %vm43_vm0, %v204_v32 }
  0xc8   :  { %210 = vsyncpa [#allocation3], 1 }
  0xc9   :  { %211 = vsyncpa [#allocation5], 1 }

</bundles_post_ra>
